<compile_context>
chip_gen: v7x
topology: tpu7x:2x2x1
jax: 0.10.0
libtpu: 0.0.40
codegen_flags: <defaults>
</compile_context>

<pallas_src>
import functools

import jax
import jax.numpy as jnp
from jax import lax
from jax.experimental import pallas as pl
from jax.experimental.pallas import tpu as pltpu


def _round_up(x, m):
    return ((x + m - 1) // m) * m


def _cdiv(a, b):
    return -(-a // b)


def _tpu_budget():
    """(scoped vmem limit bytes, tensorcores per chip), queried from hardware."""
    vmem_bytes = 64 << 20            # conservative default (v7x-sized VMEM)
    n_cores = 1
    try:
        info = pltpu.get_tpu_info()
        vmem_bytes = int(getattr(info, "vmem_capacity_bytes", vmem_bytes) or vmem_bytes)
        for attr in ("num_cores", "core_count", "tensorcores_per_chip", "num_tensorcores"):
            v = getattr(info, attr, None)
            if v:
                n_cores = int(v)
                break
    except Exception:
        pass
    vmem_limit = max(32 << 20, (vmem_bytes * 3) // 4)   # ~96 MiB on v5e/v6e, ~48 MiB on v7x
    return vmem_limit, n_cores


def _excite(pooled, w1t, b1, w2t, b2, use_mxu):
    """Squeeze/excite FC stack on pooled (NB, C) f32 rows -> (NB, C) sigmoid gate.

    use_mxu is a static bool: MXU GEMMs for big batched blocks, VPU
    broadcast-multiply + reduce for tiny ones.  Biases are broadcast adds
    (no ones-column concat / lane relayout).
    """
    if use_mxu:
        y = jnp.dot(pooled, w1t, preferred_element_type=jnp.float32) + b1
        y = jnp.maximum(y, 0.0)
        y = jnp.dot(y, w2t, preferred_element_type=jnp.float32) + b2
    else:
        y = jnp.sum(pooled[:, :, None] * w1t[None, :, :], axis=1) + b1    # (NB, C8)
        y = jnp.maximum(y, 0.0)
        y = jnp.sum(y[:, :, None] * w2t[None, :, :], axis=1) + b2         # (NB, C)
    return jax.nn.sigmoid(y)


# ---------------------------------------------------------------------------
# Single-pass (fused) path: whole (nb, C, HW) slab per grid step.
# ---------------------------------------------------------------------------
def _ca_fused_kernel(x_ref, w1t_ref, b1_ref, w2t_ref, b2_ref, o_ref, *, inv_hw, use_mxu):
    x = x_ref[...]                                               # (nb, C, HW), I/O dtype
    pooled = jnp.sum(x.astype(jnp.float32), axis=-1) * inv_hw    # (nb, C) f32 mean
    gate = _excite(pooled, w1t_ref[...], b1_ref[...], w2t_ref[...], b2_ref[...], use_mxu)
    # Gating multiply stays in the I/O dtype (no f32 copy of the whole block).
    o_ref[...] = x * gate.astype(o_ref.dtype)[:, :, None]


def _ca_fused(x, w1t, b1, w2t, b2, vmem_limit, target_block, n_cores):
    N, C, H, W = x.shape
    HW = H * W
    itemsize = jnp.dtype(x.dtype).itemsize
    row_bytes = C * HW * itemsize

    nb = max(1, target_block // row_bytes)
    nb = min(nb, N)
    if n_cores >= 2 and N >= 2:
        nb = min(nb, _cdiv(N, 2))        # keep >= 2 grid steps so both TCs get work
    grid_n = _cdiv(N, nb)                # ragged N: OOB rows are discarded by the pipeline
    use_mxu = (nb >= 8 and C >= 128)

    xr = x.reshape(N, C, HW)             # metadata-only reshape
    out = pl.pallas_call(
        functools.partial(_ca_fused_kernel, inv_hw=1.0 / HW, use_mxu=use_mxu),
        out_shape=jax.ShapeDtypeStruct((N, C, HW), x.dtype),
        grid_spec=pl.GridSpec(
            grid=(grid_n,),
            in_specs=[
                pl.BlockSpec((nb, C, HW), lambda n: (n, 0, 0)),   # full C, full HW: legal
                pl.BlockSpec(w1t.shape, lambda n: (0, 0)),
                pl.BlockSpec(b1.shape, lambda n: (0, 0)),
                pl.BlockSpec(w2t.shape, lambda n: (0, 0)),
                pl.BlockSpec(b2.shape, lambda n: (0, 0)),
            ],
            out_specs=pl.BlockSpec((nb, C, HW), lambda n: (n, 0, 0)),
        ),
        compiler_params=pltpu.CompilerParams(
            dimension_semantics=("parallel",),
            vmem_limit_bytes=vmem_limit),
    )(xr, w1t, b1, w2t, b2)
    return out.reshape(N, C, H, W)


# ---------------------------------------------------------------------------
# Two-pass path for feature maps too big to hold a whole (C, HW) row in VMEM:
# pass 1 = tiled pooled-sum reduction + tiny squeeze/excite -> gate,
# pass 2 = tiled broadcast multiply.  No host-side padding: ragged spatial
# tail tiles are masked in-kernel (pass 1) / OOB-discarded (pass 2).
# ---------------------------------------------------------------------------
def _ca_gate_kernel(x_ref, w1t_ref, b1_ref, w2t_ref, b2_ref, g_ref, *, inv_hw, hw, hw_tile):
    h = pl.program_id(1)

    @pl.when(h == 0)
    def _():
        g_ref[...] = jnp.zeros_like(g_ref)

    x = x_ref[...].astype(jnp.float32)                           # (1, C, hw_tile)
    # Mask the ragged spatial tail of the last tile (reads past HW are undefined).
    pos = h * hw_tile + lax.broadcasted_iota(jnp.int32, x.shape, 2)
    x = jnp.where(pos < hw, x, 0.0)
    g_ref[...] += jnp.sum(x, axis=-1)[:, :, None]                # (1, C, 1) partial sum

    @pl.when(h == pl.num_programs(1) - 1)
    def _():
        pooled = g_ref[...][:, :, 0] * inv_hw                    # (1, C)
        gate = _excite(pooled, w1t_ref[...], b1_ref[...],
                       w2t_ref[...], b2_ref[...], use_mxu=False)
        g_ref[...] = gate[:, :, None]


def _ca_scale_kernel(x_ref, g_ref, o_ref):
    # Multiply in the I/O dtype; gate block is (1, C, 1), broadcast over lanes.
    o_ref[...] = x_ref[...] * g_ref[...].astype(o_ref.dtype)


def _ca_two_pass(x, w1t, b1, w2t, b2, vmem_limit, target_block):
    N, C, H, W = x.shape
    HW = H * W
    itemsize = jnp.dtype(x.dtype).itemsize

    lanes = max(128, (target_block // (C * itemsize)) // 128 * 128)
    if lanes >= HW:
        hw_tile, n_hw = HW, 1                    # block == full dim: legal for any HW
    else:
        n_hw = _cdiv(HW, lanes)
        hw_tile = _round_up(_cdiv(HW, n_hw), 128)   # bounded overhang, no host pad
        n_hw = _cdiv(HW, hw_tile)

    xr = x.reshape(N, C, HW)

    # Pass 1: tiled pooled-sum reduction + squeeze/excite -> gate (N, C, 1) f32.
    gate = pl.pallas_call(
        functools.partial(_ca_gate_kernel, inv_hw=1.0 / HW, hw=HW, hw_tile=hw_tile),
        out_shape=jax.ShapeDtypeStruct((N, C, 1), jnp.float32),
        grid_spec=pl.GridSpec(
            grid=(N, n_hw),
            in_specs=[
                pl.BlockSpec((1, C, hw_tile), lambda n, h: (n, 0, h)),
                pl.BlockSpec(w1t.shape, lambda n, h: (0, 0)),
                pl.BlockSpec(b1.shape, lambda n, h: (0, 0)),
                pl.BlockSpec(w2t.shape, lambda n, h: (0, 0)),
                pl.BlockSpec(b2.shape, lambda n, h: (0, 0)),
            ],
            out_specs=pl.BlockSpec((1, C, 1), lambda n, h: (n, 0, 0)),
        ),
        compiler_params=pltpu.CompilerParams(
            dimension_semantics=("parallel", "arbitrary"),
            vmem_limit_bytes=vmem_limit),
    )(xr, w1t, b1, w2t, b2)

    # Pass 2: tiled broadcast multiply (fully parallel grid, OOB writes discarded).
    out = pl.pallas_call(
        _ca_scale_kernel,
        out_shape=jax.ShapeDtypeStruct((N, C, HW), x.dtype),
        grid_spec=pl.GridSpec(
            grid=(N, n_hw),
            in_specs=[
                pl.BlockSpec((1, C, hw_tile), lambda n, h: (n, 0, h)),
                pl.BlockSpec((1, C, 1), lambda n, h: (n, 0, 0)),
            ],
            out_specs=pl.BlockSpec((1, C, hw_tile), lambda n, h: (n, 0, h)),
        ),
        compiler_params=pltpu.CompilerParams(
            dimension_semantics=("parallel", "parallel"),
            vmem_limit_bytes=vmem_limit),
    )(xr, gate)
    return out.reshape(N, C, H, W)


def ca_layer(x, w1, b1, w2, b2, *, force_mode=None, tile_bytes=None):
    """x: (N, C, H, W); w1: (C//8, C); b1: (C//8,); w2: (C, C//8); b2: (C,)."""
    N, C, H, W = x.shape
    HW = H * W
    itemsize = jnp.dtype(x.dtype).itemsize

    vmem_limit, n_cores = _tpu_budget()
    # Fused-path VMEM budget: 2 input + 2 output pipeline buffers (I/O dtype)
    # plus one f32 upcast temp for the pooled sum, with a small fixed margin.
    factor = 4 + max(1, 4 // itemsize)
    fused_cap = max(1 << 20, (vmem_limit - (2 << 20)) // factor)
    target_block = min(8 << 20, fused_cap)
    if tile_bytes is not None:
        target_block = min(tile_bytes, fused_cap)

    # Pre-transposed f32 weights + 2-D row biases (broadcast add in-kernel).
    w1t = jnp.asarray(w1, jnp.float32).T          # (C, C//8)
    b1r = jnp.asarray(b1, jnp.float32)[None, :]   # (1, C//8)
    w2t = jnp.asarray(w2, jnp.float32).T          # (C//8, C)
    b2r = jnp.asarray(b2, jnp.float32)[None, :]   # (1, C)

    row_bytes = C * HW * itemsize
    mode = force_mode
    if mode is None:
        mode = "fused" if row_bytes <= fused_cap else "two_pass"

    if mode == "fused":
        return _ca_fused(x, w1t, b1r, w2t, b2r, vmem_limit, target_block, n_cores)
    return _ca_two_pass(x, w1t, b1r, w2t, b2r, vmem_limit, target_block)


def ca_layer_ref(x, w1, b1, w2, b2):
    """Pure-JAX reference matching the PyTorch forward."""
    pooled = jnp.mean(x, axis=(2, 3))                            # (N, C)
    y = jnp.maximum(pooled @ w1.T + b1, 0.0)                     # (N, C//8)
    y = jax.nn.sigmoid(y @ w2.T + b2)                            # (N, C)
    return x * y[:, :, None, None]


if __name__ == "__main__":
    key = jax.random.PRNGKey(0)

    def make_inputs(key, N, C, H, W):
        C8 = max(1, C // 8)
        kx, kw1, kb1, kw2, kb2 = jax.random.split(key, 5)
        x = jax.random.normal(kx, (N, C, H, W), dtype=jnp.float32)
        w1 = jax.random.normal(kw1, (C8, C), dtype=jnp.float32) * (1.0 / jnp.sqrt(C))
        b1 = jax.random.normal(kb1, (C8,), dtype=jnp.float32) * 0.1
        w2 = jax.random.normal(kw2, (C, C8), dtype=jnp.float32) * (1.0 / jnp.sqrt(C8))
        b2 = jax.random.normal(kb2, (C,), dtype=jnp.float32) * 0.1
        return x, w1, b1, w2, b2

    k1, k2, k3 = jax.random.split(key, 3)

    # 1) Main case (module spec shapes): fused path, no padding / slicing anywhere.
    x, w1, b1, w2, b2 = make_inputs(k1, 2, 32, 16, 16)
    ref = ca_layer_ref(x, w1, b1, w2, b2)
    out = jax.block_until_ready(ca_layer(x, w1, b1, w2, b2))
    assert out.shape == x.shape
    assert jnp.allclose(out, ref, atol=1e-5, rtol=1e-5)

    # 2) Two-pass path with real spatial tiling (tile_bytes shrunk so n_hw > 1).
    out2 = jax.block_until_ready(
        ca_layer(x, w1, b1, w2, b2, force_mode="two_pass", tile_bytes=16 * 1024))
    assert jnp.allclose(out2, ref, atol=1e-5, rtol=1e-5)

    # 3) Ragged N (grid overhang) + non-128-multiple HW in the fused path.
    x3, w13, b13, w23, b23 = make_inputs(k2, 3, 16, 7, 9)
    ref3 = ca_layer_ref(x3, w13, b13, w23, b23)
    out3 = jax.block_until_ready(ca_layer(x3, w13, b13, w23, b23, tile_bytes=8 * 1024))
    assert out3.shape == x3.shape
    assert jnp.allclose(out3, ref3, atol=1e-5, rtol=1e-5)

    # 4) Two-pass with a ragged spatial tail tile (HW=190, hw_tile=128): in-kernel mask.
    x4, w14, b14, w24, b24 = make_inputs(k3, 2, 16, 10, 19)
    ref4 = ca_layer_ref(x4, w14, b14, w24, b24)
    out4 = jax.block_until_ready(
        ca_layer(x4, w14, b14, w24, b24, force_mode="two_pass", tile_bytes=8 * 1024))
    assert jnp.allclose(out4, ref4, atol=1e-5, rtol=1e-5)

    print("KERNEL_OK")
</pallas_src>

<mosaic_0001>
module attributes {stable_mosaic.version = 11 : i64} {
  func.func @_ca_fused_kernel(%arg0: i32, %arg1: memref<2x32x256xf32, #tpu.memory_space<vmem>>, %arg2: memref<32x4xf32, #tpu.memory_space<vmem>>, %arg3: memref<1x4xf32, #tpu.memory_space<vmem>>, %arg4: memref<4x32xf32, #tpu.memory_space<vmem>>, %arg5: memref<1x32xf32, #tpu.memory_space<vmem>>, %arg6: memref<2x32x256xf32, #tpu.memory_space<vmem>>) attributes {dimension_semantics = [#tpu.dimension_semantics<parallel>], iteration_bounds = array<i64: 1>, scalar_prefetch = 0 : i64, scratch_operands = 0 : i64, tpu.core_type = #tpu.core_type<tc>, window_params = [{transform_indices = @transform_0, window_bounds = array<i64: 2, 32, 256>}, {pipeline_mode = #tpu.pipeline_mode<synchronous>, transform_indices = @transform_1, window_bounds = array<i64: 32, 4>}, {pipeline_mode = #tpu.pipeline_mode<synchronous>, transform_indices = @transform_2, window_bounds = array<i64: 1, 4>}, {pipeline_mode = #tpu.pipeline_mode<synchronous>, transform_indices = @transform_3, window_bounds = array<i64: 4, 32>}, {pipeline_mode = #tpu.pipeline_mode<synchronous>, transform_indices = @transform_4, window_bounds = array<i64: 1, 32>}, {transform_indices = @transform_5, window_bounds = array<i64: 2, 32, 256>}]} {
    %c0 = arith.constant 0 : index
    %c0_0 = arith.constant 0 : index
    %c0_1 = arith.constant 0 : index
    %0 = vector.load %arg1[%c0, %c0_0, %c0_1] : memref<2x32x256xf32, #tpu.memory_space<vmem>>, vector<2x32x256xf32>
    %cst = arith.constant dense<0.000000e+00> : vector<2x32xf32>
    %1 = vector.multi_reduction <add>, %0, %cst [2] : vector<2x32x256xf32> to vector<2x32xf32>
    %cst_2 = arith.constant 3.906250e-03 : f32
    %2 = vector.broadcast %cst_2 : f32 to vector<2x32xf32>
    %3 = arith.mulf %1, %2 : vector<2x32xf32>
    %c0_3 = arith.constant 0 : index
    %c0_4 = arith.constant 0 : index
    %4 = vector.load %arg2[%c0_3, %c0_4] : memref<32x4xf32, #tpu.memory_space<vmem>>, vector<32x4xf32>
    %c0_5 = arith.constant 0 : index
    %c0_6 = arith.constant 0 : index
    %5 = vector.load %arg3[%c0_5, %c0_6] : memref<1x4xf32, #tpu.memory_space<vmem>>, vector<1x4xf32>
    %c0_7 = arith.constant 0 : index
    %c0_8 = arith.constant 0 : index
    %6 = vector.load %arg4[%c0_7, %c0_8] : memref<4x32xf32, #tpu.memory_space<vmem>>, vector<4x32xf32>
    %c0_9 = arith.constant 0 : index
    %c0_10 = arith.constant 0 : index
    %7 = vector.load %arg5[%c0_9, %c0_10] : memref<1x32xf32, #tpu.memory_space<vmem>>, vector<1x32xf32>
    %8 = vector.shape_cast %3 : vector<2x32xf32> to vector<2x32x1xf32>
    %9 = vector.shape_cast %4 : vector<32x4xf32> to vector<1x32x4xf32>
    %10 = vector.broadcast %8 : vector<2x32x1xf32> to vector<2x32x4xf32>
    %11 = vector.broadcast %9 : vector<1x32x4xf32> to vector<2x32x4xf32>
    %12 = arith.mulf %10, %11 : vector<2x32x4xf32>
    %cst_11 = arith.constant dense<0.000000e+00> : vector<2x4xf32>
    %13 = vector.multi_reduction <add>, %12, %cst_11 [1] : vector<2x32x4xf32> to vector<2x4xf32>
    %14 = vector.broadcast %5 : vector<1x4xf32> to vector<2x4xf32>
    %15 = arith.addf %13, %14 : vector<2x4xf32>
    %cst_12 = arith.constant 0.000000e+00 : f32
    %16 = vector.broadcast %cst_12 : f32 to vector<2x4xf32>
    %17 = arith.maximumf %15, %16 : vector<2x4xf32>
    %18 = vector.shape_cast %17 : vector<2x4xf32> to vector<2x4x1xf32>
    %19 = vector.shape_cast %6 : vector<4x32xf32> to vector<1x4x32xf32>
    %20 = vector.broadcast %18 : vector<2x4x1xf32> to vector<2x4x32xf32>
    %21 = vector.broadcast %19 : vector<1x4x32xf32> to vector<2x4x32xf32>
    %22 = arith.mulf %20, %21 : vector<2x4x32xf32>
    %cst_13 = arith.constant dense<0.000000e+00> : vector<2x32xf32>
    %23 = vector.multi_reduction <add>, %22, %cst_13 [1] : vector<2x4x32xf32> to vector<2x32xf32>
    %24 = vector.broadcast %7 : vector<1x32xf32> to vector<2x32xf32>
    %25 = arith.addf %23, %24 : vector<2x32xf32>
    %26 = arith.negf %25 : vector<2x32xf32>
    %27 = math.exp %26 : vector<2x32xf32>
    %cst_14 = arith.constant 1.000000e+00 : f32
    %28 = vector.broadcast %cst_14 : f32 to vector<2x32xf32>
    %29 = arith.addf %28, %27 : vector<2x32xf32>
    %30 = arith.divf %28, %29 : vector<2x32xf32>
    %31 = vector.shape_cast %30 : vector<2x32xf32> to vector<2x32x1xf32>
    %32 = vector.broadcast %31 : vector<2x32x1xf32> to vector<2x32x256xf32>
    %33 = arith.mulf %0, %32 : vector<2x32x256xf32>
    %c0_15 = arith.constant 0 : index
    %c0_16 = arith.constant 0 : index
    %c0_17 = arith.constant 0 : index
    %34 = vector.load %arg6[%c0_15, %c0_16, %c0_17] : memref<2x32x256xf32, #tpu.memory_space<vmem>>, vector<2x32x256xf32>
    tpu.vector_store %arg6[%c0_15, %c0_16, %c0_17], %33 {strides = array<i32>} : memref<2x32x256xf32, #tpu.memory_space<vmem>>, vector<2x32x256xf32>,
    return
  }
  func.func @transform_0(%arg0: i32) -> (i32, i32, i32) {
    %c0_i32 = arith.constant 0 : i32
    %c0_i32_0 = arith.constant 0 : i32
    %c0_i32_1 = arith.constant 0 : i32
    return %arg0, %c0_i32, %c0_i32_0 : i32, i32, i32
  }
  func.func @transform_1(%arg0: i32) -> (i32, i32) {
    %c0_i32 = arith.constant 0 : i32
    %c0_i32_0 = arith.constant 0 : i32
    %c0_i32_1 = arith.constant 0 : i32
    return %c0_i32, %c0_i32_0 : i32, i32
  }
  func.func @transform_2(%arg0: i32) -> (i32, i32) {
    %c0_i32 = arith.constant 0 : i32
    %c0_i32_0 = arith.constant 0 : i32
    %c0_i32_1 = arith.constant 0 : i32
    return %c0_i32, %c0_i32_0 : i32, i32
  }
  func.func @transform_3(%arg0: i32) -> (i32, i32) {
    %c0_i32 = arith.constant 0 : i32
    %c0_i32_0 = arith.constant 0 : i32
    %c0_i32_1 = arith.constant 0 : i32
    return %c0_i32, %c0_i32_0 : i32, i32
  }
  func.func @transform_4(%arg0: i32) -> (i32, i32) {
    %c0_i32 = arith.constant 0 : i32
    %c0_i32_0 = arith.constant 0 : i32
    %c0_i32_1 = arith.constant 0 : i32
    return %c0_i32, %c0_i32_0 : i32, i32
  }
  func.func @transform_5(%arg0: i32) -> (i32, i32, i32) {
    %c0_i32 = arith.constant 0 : i32
    %c0_i32_0 = arith.constant 0 : i32
    %c0_i32_1 = arith.constant 0 : i32
    return %arg0, %c0_i32, %c0_i32_0 : i32, i32, i32
  }
}

</mosaic_0001>

<bundles_post_ra>
// kernel: tpu_custom_call.1
= control target key start
LH: loop header
LB: loop body
LE: loop exit
PB: predicated region body
PF: predicated region fallthrough
CT: control target
= control target key end

     0   :  { %10 = vsyncpa [#allocation3], 0  ;;  %s494_s0 = inlined_call_operand.hbm [shape: f32[2,32,256], index: 0, kind: input, shape index: {}]   ;;  %s495_s1 = inlined_call_operand.vmem [shape: f32[32,4], index: 1, kind: input, shape index: {}]   ;;  %s496_s2 = inlined_call_operand.vmem [shape: f32[1,4], index: 2, kind: input, shape index: {}]   ;;  %s497_s3 = inlined_call_operand.vmem [shape: f32[4,32], index: 3, kind: input, shape index: {}]   ;;  %s498_s4 = inlined_call_operand.vmem [shape: f32[1,32], index: 4, kind: input, shape index: {}]   ;;  %s499_s5 = inlined_call_operand.hbm [shape: f32[2,32,256], index: 5, kind: output, shape index: {}]  }
   0x1   :  { %11 = vsyncpa [#allocation4], 0  ;;  %s337_s18 = smov [#allocation2]   ;;  %s289_s22 = scalar_lea.hbm %s494_s0, 2048 }
   0x2   :  { %s17_s19 = sshll.u32 %s337_s18, 4  ;;  %p290_p0 = scmp.ne.s32.totalorder %s494_s0, %s289_s22  ;;  %s18_s19 = int_to_ptr.vmem [resolvable:$true] %s17_s19 }
   0x3   :  { %p293_p1 = scmp.lt.u32.totalorder %s289_s22, %s494_s0 }
   0x5   :  { %p295_p2 = pnand %p293_p1, %p290_p0 }
   0x7   :  { %298 = shalt.err (!%p295_p2)
}
   0x8   :  { %s299_s27 = scalar_lea.vmem %s18_s19, 2048  ;;  %p304_p4 = scmp.lt.s32.totalorder %s18_s19, %s18_s19 }
   0x9   :  { %p300_p3 = scmp.ne.s32.totalorder %s18_s19, %s299_s27  ;;  %p305_p5 = scmp.lt.s32.totalorder %s299_s27, %s299_s27 }
   0xb   :  { %p306_p6 = por %p305_p5, %p304_p4 }
   0xd   :  { %p307_p7 = pnand %p306_p6, %p300_p3 }
   0xf   :  { %310 = shalt.err (!%p307_p7)
}
  0x10   :  { %s338_s28 = smov 256   ;;  %s339_s29 = smov 16  }
  0x11   :  { %23 = dma.hbm_to_vmem [thread:$0]  %s494_s0, 2048, %s18_s19, [#allocation3], %s338_s28, %s338_s28, %s339_s29  }
  0x12   :  { %333 = dma.done.wait [#allocation3], 2048  }
  0x13   :  { %334 = vsyncadd [#allocation3], 4294965248  ;;  %v386_v0 = vld [vmem:[#allocation2 + $0x40] sm:$0xff]  ;;  %v388_v1 = vld [vmem:[#allocation2 + $0x48] sm:$0xff]  ;;  %vm98_vm0 = vcmask 31744   ;;  %vm151_vm1 = vcmask 257024  }
  0x14   :  { %v390_v2 = vld [vmem:[#allocation2] sm:$0xff]  ;;  %v63_v3 = vadd.f32 %v388_v1, %v386_v0  ;;  %v394_v4 = vld [vmem:[#allocation2 + $0x8] sm:$0xff]  ;;  %v396_v5 = vld [vmem:[#allocation2 + $0x50] sm:$0xff] }
  0x15   :  { %v398_v6 = vld [vmem:[#allocation2 + $0x58] sm:$0xff]  ;;  %v51_v7 = vadd.f32 %v394_v4, %v390_v2  ;;  %v402_v8 = vld [vmem:[#allocation2 + $0x10] sm:$0xff]  ;;  %v410_v12 = vld [vmem:[#allocation2 + $0x60] sm:$0xff] }
  0x16   :  { %v404_v9 = vld [vmem:[#allocation2 + $0x18] sm:$0xff]  ;;  %64 = vadd.xlane.f32.xlu1 %v63_v3  ;;  %v66_v10 = vadd.f32 %v398_v6, %v396_v5  ;;  %v412_v13 = vld [vmem:[#allocation2 + $0x68] sm:$0xff]  ;;  %v414_v14 = vld [vmem:[#allocation2 + $0x20] sm:$0xff] }
  0x17   :  { %52 = vadd.xlane.f32.xlu0 %v51_v7  ;;  %v54_v11 = vadd.f32 %v404_v9, %v402_v8  ;;  %v416_v15 = vld [vmem:[#allocation2 + $0x28] sm:$0xff]  ;;  %v69_v16 = vadd.f32 %v412_v13, %v410_v12  ;;  %v422_v18 = vld [vmem:[#allocation2 + $0x70] sm:$0xff]  ;;  %v424_v19 = vld [vmem:[#allocation2 + $0x78] sm:$0xff] }
  0x18   :  { %v57_v17 = vadd.f32 %v416_v15, %v414_v14  ;;  %v426_v20 = vld [vmem:[#allocation2 + $0x30] sm:$0xff]  ;;  %v428_v21 = vld [vmem:[#allocation2 + $0x38] sm:$0xff]  ;;  %v72_v22 = vadd.f32 %v424_v19, %v422_v18  ;;  %v83_v27 = vld [vmem:[%s495_s1] sm:$0xff] }
  0x19   :  { %v60_v23 = vadd.f32 %v428_v21, %v426_v20  ;;  %v84_v30 = vld [vmem:[%s495_s1 + $0x8] sm:$0xff]  ;;  %v85_v40 = vld [vmem:[%s495_s1 + $0x10] sm:$0xff]  ;;  %v86_v49 = vld [vmem:[%s495_s1 + $0x18] sm:$0xff] }
  0x1a   :  { %67 = vadd.xlane.f32.xlu1 %v66_v10 }
  0x1b   :  { %55 = vadd.xlane.f32.xlu0 %v54_v11 }
  0x1e   :  { %70 = vadd.xlane.f32.xlu1 %v69_v16 }
  0x1f   :  { %58 = vadd.xlane.f32.xlu0 %v57_v17 }
  0x22   :  { %73 = vadd.xlane.f32.xlu1 %v72_v22 }
  0x23   :  { %61 = vadd.xlane.f32.xlu0 %v60_v23  ;;  %v135_v23 = vlaneseq }
  0xa3   :  { %v65_v24 = vpop.xlane.xlu1 %64 }
  0xa4   :  { %v79_v25 = vmul.f32 0.00390625, %v65_v24  ;;  %v53_v26 = vpop.xlane.xlu0 %52 }
  0xa5   :  { %v75_v33 = vmul.f32 0.00390625, %v53_v26 }
  0xa6   :  { %v94_v28 = vmul.f32 %v83_v27, %v79_v25 }
  0xa7   :  { %v68_v29 = vpop.xlane.xlu1 %67  ;;  %v90_v43 = vmul.f32 %v83_v27, %v75_v33 }
  0xa8   :  { %v80_v31 = vmul.f32 0.00390625, %v68_v29  ;;  %v56_v32 = vpop.xlane.xlu0 %55  ;;  %v112_v35 = vsel %vm98_vm0, %v94_v28, 0.0  ;;  %v136_v28 = vshrl.u32 %v135_v23, 7  ;;  %v273_v29 = vld [vmem:[%s496_s2] ss:$0 sm:$0xff] }
  0xa9   :  { %v76_v34 = vmul.f32 0.00390625, %v56_v32  ;;  %v99_v54 = vsel %vm98_vm0, %v90_v43, 0.0 }
  0xaa   :  { %v95_v36 = vmul.f32 %v84_v30, %v80_v31 }
  0xab   :  { %v91_v37 = vmul.f32 %v84_v30, %v76_v34  ;;  %v71_v38 = vpop.xlane.xlu1 %70  ;;  %v137_v34 = vsub.s32 0, %v136_v28 }
  0xac   :  { %v113_v39 = vsel %vm98_vm0, %v95_v36, 0.0  ;;  %v81_v41 = vmul.f32 0.00390625, %v71_v38  ;;  %v59_v42 = vpop.xlane.xlu0 %58 }
  0xad   :  { %v114_v44 = vadd.f32 %v113_v39, %v112_v35  ;;  %v77_v45 = vmul.f32 0.00390625, %v59_v42  ;;  %v100_v47 = vsel %vm98_vm0, %v91_v37, 0.0 }
  0xae   :  { %v96_v46 = vmul.f32 %v85_v40, %v81_v41  ;;  %v101_v58 = vadd.f32 %v100_v47, %v99_v54 }
  0xaf   :  { %v92_v48 = vmul.f32 %v85_v40, %v77_v45  ;;  %v74_v50 = vpop.xlane.xlu1 %73  ;;  %v88_v40 = vld [vmem:[%s497_s3] sm:$0xf]  ;;  %s340_s3 = smov [#allocation5]  }
  0xb0   :  { %v115_v51 = vsel %vm98_vm0, %v96_v46, 0.0  ;;  %v82_v52 = vmul.f32 0.00390625, %v74_v50  ;;  %v62_v53 = vpop.xlane.xlu0 %61 }
  0xb1   :  { %v116_v55 = vadd.f32 %v115_v51, %v114_v44  ;;  %v102_v56 = vsel %vm98_vm0, %v92_v48, 0.0  ;;  %v78_v57 = vmul.f32 0.00390625, %v62_v53 }
  0xb2   :  { %v97_v59 = vmul.f32 %v86_v49, %v82_v52  ;;  %v103_v61 = vadd.f32 %v102_v56, %v101_v58  ;;  %v274_v56 = vld [vmem:[%s498_s4] ss:$0 sm:$0xff]  ;;  %s261_s4 = sshll.u32 %s340_s3, 4  ;;  %s262_s4 = int_to_ptr.vmem [resolvable:$true] %s261_s4 }
  0xb3   :  { %v93_v60 = vmul.f32 %v86_v49, %v78_v57  ;;  %s311_s18 = scalar_lea.vmem %s262_s4, 2048  ;;  %p316_p9 = scmp.lt.s32.totalorder %s262_s4, %s262_s4 }
  0xb4   :  { %v117_v62 = vsel %vm98_vm0, %v97_v59, 0.0  ;;  %p312_p8 = scmp.ne.s32.totalorder %s262_s4, %s311_s18  ;;  %p317_p10 = scmp.lt.s32.totalorder %s311_s18, %s311_s18 }
  0xb5   :  { %v118_v63 = vadd.f32 %v117_v62, %v116_v55  ;;  %v104_v3 = vsel %vm98_vm0, %v93_v60, 0.0 }
  0xb6   :  { %v105_v7 = vadd.f32 %v104_v3, %v103_v61  ;;  %p318_p11 = por %p317_p10, %p316_p9 }
  0xb7   :  { %v119_v10 = vrot.slane %v118_v63, 4 }
  0xb8   :  { %v106_v11 = vrot.slane %v105_v7, 4  ;;  %p319_p12 = pnand %p318_p11, %p312_p8 }
  0xb9   :  { %v120_v16 = vadd.f32 %v119_v10, %v118_v63 }
  0xba   :  { %v107_v17 = vadd.f32 %v106_v11, %v105_v7 }
  0xbb   :  { %v121_v22 = vrot.slane %v120_v16, 2 }
  0xbc   :  { %v108_v24 = vrot.slane %v107_v17, 2 }
  0xbd   :  { %v122_v25 = vadd.f32 %v121_v22, %v120_v16 }
  0xbe   :  { %v109_v26 = vadd.f32 %v108_v24, %v107_v17 }
  0xbf   :  { %v123_v27 = vrot.slane %v122_v25, 1 }
  0xc0   :  { %v110_v30 = vrot.slane %v109_v26, 1 }
  0xc1   :  { %v124_v31 = vadd.f32 %v123_v27, %v122_v25 }
  0xc2   :  { %v111_v32 = vadd.f32 %v110_v30, %v109_v26 }
  0xc3   :  { %v132_v33 = vadd.f32 %v273_v29, %v124_v31 }
  0xc4   :  { %v131_v35 = vadd.f32 %v273_v29, %v111_v32 }
  0xc5   :  { %v134_v36 = vmax.f32 %v132_v33, 0.0 }
  0xc6   :  { %v133_v37 = vmax.f32 %v131_v35, 0.0 }
  0xc7   :  { %v145_v38 = vrot.slane %v134_v36, %v137_v34 }
  0xc8   :  { %v138_v39 = vrot.slane %v133_v37, %v137_v34 }
  0xc9   :  { %147 = vbcast.lane.b32.xlu1 %v145_v38, 256 }
  0xca   :  { %140 = vbcast.lane.b32.xlu0 %v138_v39, 256 }
 0x13b   :  { %v148_v41 = vpop.permute.xlu1 %147 }
 0x13c   :  { %v150_v42 = vmul.f32 %v148_v41, %v88_v40  ;;  %v141_v43 = vpop.permute.xlu0 %140 }
 0x13d   :  { %v149_v44 = vmul.f32 %v141_v43, %v88_v40 }
 0x13e   :  { %v159_v45 = vsel %vm151_vm1, %v150_v42, 0.0 }
 0x13f   :  { %v160_v46 = vrot.slane %v159_v45, 4  ;;  %v152_v47 = vsel %vm151_vm1, %v149_v44, 0.0 }
 0x140   :  { %v153_v48 = vrot.slane %v152_v47, 4 }
 0x141   :  { %v161_v49 = vadd.f32 %v160_v46, %v159_v45 }
 0x142   :  { %v154_v50 = vadd.f32 %v153_v48, %v152_v47 }
 0x143   :  { %v162_v51 = vrot.slane %v161_v49, 2 }
 0x144   :  { %v155_v52 = vrot.slane %v154_v50, 2 }
 0x145   :  { %v163_v53 = vadd.f32 %v162_v51, %v161_v49 }
 0x146   :  { %v156_v54 = vadd.f32 %v155_v52, %v154_v50 }
 0x147   :  { %v164_v55 = vrot.slane %v163_v53, 1 }
 0x148   :  { %v157_v57 = vrot.slane %v156_v54, 1 }
 0x149   :  { %v165_v58 = vadd.f32 %v164_v55, %v163_v53 }
 0x14a   :  { %v158_v59 = vadd.f32 %v157_v57, %v156_v54 }
 0x14b   :  { %v173_v60 = vadd.f32 %v274_v56, %v165_v58 }
 0x14c   :  { %v172_v61 = vadd.f32 %v274_v56, %v158_v59 }
 0x14d   :  { %v276_v62 = vmul.f32 -1.442695, %v173_v60 }
 0x14e   :  { %v275_v63 = vmul.f32 -1.442695, %v172_v61 }
 0x14f   :  { %281 = vpow2.f32 %v276_v62 }
 0x150   :  { %283 = vpow2.f32 %v275_v63 }
 0x159   :  { %v282_v3 = vpop.eup %281 }
 0x15a   :  { %v284_v7 = vpop.eup %283  ;;  %v181_v10 = vadd.f32 1.0, %v282_v3 }
 0x15b   :  { %v180_v11 = vadd.f32 1.0, %v284_v7 }
 0x15d   :  { %285 = vrcp.f32 %v180_v11 }
 0x15e   :  { %287 = vrcp.f32 %v181_v10 }
 0x167   :  { %v286_v16 = vpop.eup %285 }
 0x168   :  { %v189_v17 = vrot.slane %v286_v16, %v137_v34  ;;  %v288_v22 = vpop.eup %287 }
 0x169   :  { %v208_v23 = vrot.slane %v288_v22, %v137_v34 }
 0x16a   :  { %199 = vbcast.lane.b32.xlu0 %v189_v17, 272  ;;  %191 = vbcast.lane.b32.xlu1 %v189_v17, 256 }
 0x16e   :  { %210 = vbcast.lane.b32.xlu0 %v208_v23, 256  ;;  %195 = vbcast.lane.b32.xlu1 %v189_v17, 264 }
 0x172   :  { %218 = vbcast.lane.b32.xlu0 %v208_v23, 272  ;;  %203 = vbcast.lane.b32.xlu1 %v189_v17, 280 }
 0x176   :  { %214 = vbcast.lane.b32.xlu1 %v208_v23, 264 }
 0x17a   :  { %222 = vbcast.lane.b32.xlu1 %v208_v23, 280 }
 0x1dc   :  { %v200_v24 = vpop.permute.xlu0 %199  ;;  %v192_v25 = vpop.permute.xlu1 %191 }
 0x1dd   :  { %v228_v26 = vmul.f32 %v200_v24, %v414_v14  ;;  %v229_v27 = vmul.f32 %v200_v24, %v416_v15  ;;  %v224_v28 = vmul.f32 %v192_v25, %v390_v2  ;;  %v225_v29 = vmul.f32 %v192_v25, %v394_v4 }
 0x1df   :  { %244 = vst [vmem:[#allocation5 + $0x20] sm:$0xff] %v228_v26  ;;  %245 = vst [vmem:[#allocation5 + $0x28] sm:$0xff] %v229_v27 }
 0x1e0   :  { %240 = vst [vmem:[#allocation5] sm:$0xff] %v224_v28  ;;  %241 = vst [vmem:[#allocation5 + $0x8] sm:$0xff] %v225_v29  ;;  %v211_v30 = vpop.permute.xlu0 %210  ;;  %v196_v31 = vpop.permute.xlu1 %195 }
 0x1e1   :  { %v232_v32 = vmul.f32 %v211_v30, %v386_v0  ;;  %v233_v33 = vmul.f32 %v211_v30, %v388_v1  ;;  %v226_v34 = vmul.f32 %v196_v31, %v402_v8  ;;  %v227_v14 = vmul.f32 %v196_v31, %v404_v9 }
 0x1e3   :  { %248 = vst [vmem:[#allocation5 + $0x40] sm:$0xff] %v232_v32  ;;  %249 = vst [vmem:[#allocation5 + $0x48] sm:$0xff] %v233_v33 }
 0x1e4   :  { %242 = vst [vmem:[#allocation5 + $0x10] sm:$0xff] %v226_v34  ;;  %243 = vst [vmem:[#allocation5 + $0x18] sm:$0xff] %v227_v14  ;;  %v219_v2 = vpop.permute.xlu0 %218  ;;  %v204_v4 = vpop.permute.xlu1 %203 }
 0x1e5   :  { %v236_v15 = vmul.f32 %v219_v2, %v410_v12  ;;  %v237_v35 = vmul.f32 %v219_v2, %v412_v13  ;;  %v230_v36 = vmul.f32 %v204_v4, %v426_v20  ;;  %v231_v0 = vmul.f32 %v204_v4, %v428_v21 }
 0x1e7   :  { %252 = vst [vmem:[#allocation5 + $0x60] sm:$0xff] %v236_v15  ;;  %253 = vst [vmem:[#allocation5 + $0x68] sm:$0xff] %v237_v35 }
 0x1e8   :  { %246 = vst [vmem:[#allocation5 + $0x30] sm:$0xff] %v230_v36  ;;  %247 = vst [vmem:[#allocation5 + $0x38] sm:$0xff] %v231_v0  ;;  %v215_v1 = vpop.permute.xlu1 %214 }
 0x1e9   :  { %v234_v8 = vmul.f32 %v215_v1, %v396_v5  ;;  %v235_v9 = vmul.f32 %v215_v1, %v398_v6 }
 0x1eb   :  { %250 = vst [vmem:[#allocation5 + $0x50] sm:$0xff] %v234_v8  ;;  %251 = vst [vmem:[#allocation5 + $0x58] sm:$0xff] %v235_v9 }
 0x1ec   :  { %v223_v12 = vpop.permute.xlu1 %222 }
 0x1ed   :  { %v238_v13 = vmul.f32 %v223_v12, %v422_v18  ;;  %v239_v20 = vmul.f32 %v223_v12, %v424_v19 }
 0x1ef   :  { %254 = vst [vmem:[#allocation5 + $0x70] sm:$0xff] %v238_v13  ;;  %255 = vst [vmem:[#allocation5 + $0x78] sm:$0xff] %v239_v20 }
 0x1f0   :  { %322 = shalt.err (!%p319_p12)
}
 0x1f1   :  { %s323_s21 = scalar_lea.hbm %s499_s5, 2048 }
 0x1f2   :  { %p324_p13 = scmp.ne.s32.totalorder %s499_s5, %s323_s21  ;;  %p327_p0 = scmp.lt.u32.totalorder %s323_s21, %s499_s5 }
 0x1f4   :  { %p329_p1 = pnand %p327_p0, %p324_p13 }
 0x1f6   :  { %332 = shalt.err (!%p329_p1)
}
 0x1f7   :  { %267 = dma.vmem_to_hbm [thread:$0]  %s262_s4, 2048, %s499_s5, [#allocation4], %s338_s28, %s338_s28, %s339_s29  }
 0x1f8   :  { %335 = dma.done.wait [#allocation4], 2048  }
 0x1f9   :  { %336 = vsyncadd [#allocation4], 4294965248 }
 0x1fa   :  { %271 = vsyncpa [#allocation3], 1 }
 0x1fb   :  { %272 = vsyncpa [#allocation4], 1 }

</bundles_post_ra>
